<compile_context>
chip_gen: v5e
topology: v5e:2x2
jax: 0.10.0
libtpu: 0.0.40
codegen_flags: <defaults>
</compile_context>

<pallas_src>
import jax
import jax.numpy as jnp
from jax.experimental import pallas as pl
from jax.experimental.pallas import tpu as pltpu


def _qkv_fused_kernel(x_ref, w_ref, b_ref, out_ref, acc_ref):
    """One (bm, bn) output tile of  out = feats @ W_fused + b_fused.

    x_ref:   (bm, bk)  activation tile (feats dtype)
    w_ref:   (bk, bn)  fused, pre-transposed weight tile (f32 or bf16)
    b_ref:   (1,  bn)  fused bias tile (f32)
    out_ref: (bm, bn)  fused Q|K|V output tile
    acc_ref: (bm, bn)  f32 VMEM accumulator, resident across the K grid axis
    """
    k = pl.program_id(2)

    @pl.when(k == 0)
    def _():
        acc_ref[...] = jnp.zeros_like(acc_ref)

    # Cast activations to the weight dtype (no-op for f32, bf16 MXU fast path
    # for bf16 weights); accumulate in f32.
    x = x_ref[...].astype(w_ref.dtype)
    acc_ref[...] += jnp.dot(x, w_ref[...], preferred_element_type=jnp.float32)

    @pl.when(k == pl.num_programs(2) - 1)
    def _():
        # f32 epilogue (bias add) once per output tile, then cast + store.
        out_ref[...] = (acc_ref[...] + b_ref[...]).astype(out_ref.dtype)


def fuse_qkv_params(wq, bq, wk, bk, wv, bv, *, param_dtype=jnp.float32):
    """One-time parameter prep (outside the per-call hot path).

    * Concatenate the three PyTorch-layout (out, in) weights along the output
      axis and transpose ONCE to (E, 3E) so the kernel consumes a plain RHS.
    * Zero-pad the fused output axis to a multiple of 128 so output stores are
      lane-dense (only relevant for small E; production 3E is already aligned).
    * Optionally store the weight in bf16 (param_dtype); the bias stays f32 so
      the epilogue add runs on the f32 VPU path (v5e has no bf16 VPU).
    """
    w = jnp.concatenate([wq, wk, wv], axis=0).T                 # (E, 3E)
    b = jnp.concatenate([bq, bk, bv], axis=0).reshape(1, -1)    # (1, 3E)
    n = w.shape[1]
    n_pad = ((n + 127) // 128) * 128
    if n_pad != n:
        w = jnp.pad(w, ((0, 0), (0, n_pad - n)))
        b = jnp.pad(b, ((0, 0), (0, n_pad - n)))
    return w.astype(param_dtype), b.astype(jnp.float32)


def _largest_divisor_tile(dim, max_block, align):
    """Largest multiple of `align` <= max_block that divides `dim`.

    Falls back to the full extent (always a legal BlockSpec shape).  Exact
    divisors keep the reduction axis un-ragged (no garbage partial tiles
    contributing to the accumulator).
    """
    if dim <= max_block:
        return dim
    blk = (max_block // align) * align
    while blk >= align:
        if dim % blk == 0:
            return blk
        blk -= align
    return dim


def diff_projection_attention(feats, w_fused, b_fused, *,
                              block_m=256,   # use 128 on v5e (4x128x128 MXU)
                              block_n=512,
                              block_k=512,
                              vmem_limit_bytes=None):
    """Pallas equivalent of DiffProjectionAttention.forward.

    feats:   (B, E)      activations
    w_fused: (E, N)      fused, pre-transposed weights (N = 3E padded to 128)
    b_fused: (1, N)      fused biases (f32)
    Returns (Q, K, V), each of shape (B, 1, E).
    """
    B, E = feats.shape
    k_dim, N = w_fused.shape
    assert k_dim == E and N >= 3 * E and b_fused.shape == (1, N)
    out_dtype = feats.dtype

    # Tile selection.  M: ragged tail is fine (masked output store).  N/K: pick
    # exact-divisor tiles that are multiples of 128 (lane axis) / legal sublane
    # multiples; fall back to full extent for small dims (toy shapes).
    bm = B if B <= block_m else block_m
    bn = _largest_divisor_tile(N, block_n, 128)
    bk = _largest_divisor_tile(E, block_k, 128)
    grid = (pl.cdiv(B, bm), N // bn, E // bk)

    # VMEM budget: 2x-buffered inputs + output tile + f32 accumulator, with
    # headroom, capped at 64 MiB so it is legal on v7x (and within v5e/v6e).
    w_isize = jnp.dtype(w_fused.dtype).itemsize
    x_isize = jnp.dtype(feats.dtype).itemsize
    if vmem_limit_bytes is None:
        est = (2 * (bm * bk * x_isize + bk * bn * w_isize + bn * 4)
               + 2 * bm * bn * x_isize + bm * bn * 4)
        vmem_limit_bytes = int(min(max(2 * est, 32 << 20), 64 << 20))

    cost = pl.CostEstimate(
        flops=2 * B * E * N,
        transcendentals=0,
        bytes_accessed=(feats.size * x_isize + w_fused.size * w_isize
                        + b_fused.size * 4 + B * N * x_isize),
    )

    out = pl.pallas_call(
        _qkv_fused_kernel,
        out_shape=jax.ShapeDtypeStruct((B, N), out_dtype),
        grid=grid,
        in_specs=[
            pl.BlockSpec((bm, bk), lambda m, n, k: (m, k)),   # activations
            pl.BlockSpec((bk, bn), lambda m, n, k: (k, n)),   # fused weight
            pl.BlockSpec((1, bn), lambda m, n, k: (0, n)),    # fused bias
        ],
        out_specs=pl.BlockSpec((bm, bn), lambda m, n, k: (m, n)),
        scratch_shapes=[pltpu.VMEM((bm, bn), jnp.float32)],
        compiler_params=pltpu.CompilerParams(
            dimension_semantics=("parallel", "parallel", "arbitrary"),
            vmem_limit_bytes=vmem_limit_bytes,
        ),
        cost_estimate=cost,
    )(feats, w_fused, b_fused)

    # Free views: strip lane padding, split Q|K|V, add the seq dim (unsqueeze).
    q = out[:, :E][:, None, :]
    k = out[:, E:2 * E][:, None, :]
    v = out[:, 2 * E:3 * E][:, None, :]
    return q, k, v


def _init_linear(key, out_features, in_features):
    """Deterministic init mimicking nn.Linear default (uniform +/- 1/sqrt(fan_in))."""
    kw, kb = jax.random.split(key)
    bound = 1.0 / (in_features ** 0.5)
    w = jax.random.uniform(kw, (out_features, in_features), jnp.float32,
                           minval=-bound, maxval=bound)
    b = jax.random.uniform(kb, (out_features,), jnp.float32,
                           minval=-bound, maxval=bound)
    return w, b


if __name__ == "__main__":
    B, E = 8, 32  # small batch, embed_dim

    root = jax.random.PRNGKey(0)
    k_feats, k_q, k_k, k_v = jax.random.split(root, 4)

    feats = jax.random.normal(k_feats, (B, E), jnp.float32)
    wq, bq = _init_linear(k_q, E, E)
    wk, bk = _init_linear(k_k, E, E)
    wv, bv = _init_linear(k_v, E, E)

    # Pure-JAX reference of the PyTorch forward.
    Q_ref = (feats @ wq.T + bq)[:, None, :]
    K_ref = (feats @ wk.T + bk)[:, None, :]
    V_ref = (feats @ wv.T + bv)[:, None, :]

    # --- f32-weight path (bit-matches the PyTorch reference) ---
    w_f32, b_f32 = fuse_qkv_params(wq, bq, wk, bk, wv, bv, param_dtype=jnp.float32)
    Q, K, V = diff_projection_attention(feats, w_f32, b_f32)
    jax.block_until_ready((Q, K, V))

    assert Q.shape == (B, 1, E) and K.shape == (B, 1, E) and V.shape == (B, 1, E)
    assert jnp.allclose(Q, Q_ref, atol=1e-5)
    assert jnp.allclose(K, K_ref, atol=1e-5)
    assert jnp.allclose(V, V_ref, atol=1e-5)

    # --- bf16-weight path (bandwidth-optimized; looser tolerance) ---
    w_bf16, b_bf16 = fuse_qkv_params(wq, bq, wk, bk, wv, bv, param_dtype=jnp.bfloat16)
    Qb, Kb, Vb = diff_projection_attention(feats, w_bf16, b_bf16)
    jax.block_until_ready((Qb, Kb, Vb))

    assert jnp.allclose(Qb, Q_ref, atol=5e-2, rtol=5e-2)
    assert jnp.allclose(Kb, K_ref, atol=5e-2, rtol=5e-2)
    assert jnp.allclose(Vb, V_ref, atol=5e-2, rtol=5e-2)

    print("KERNEL_OK")
</pallas_src>

<mosaic_0001>
module attributes {stable_mosaic.version = 11 : i64} {
  func.func @_qkv_fused_kernel(%arg0: i32, %arg1: i32, %arg2: i32, %arg3: memref<8x32xf32, #tpu.memory_space<vmem>>, %arg4: memref<32x128xf32, #tpu.memory_space<vmem>>, %arg5: memref<1x128xf32, #tpu.memory_space<vmem>>, %arg6: memref<8x128xf32, #tpu.memory_space<vmem>>, %arg7: memref<8x128xf32, #tpu.memory_space<vmem>>) attributes {dimension_semantics = [#tpu.dimension_semantics<parallel>, #tpu.dimension_semantics<parallel>, #tpu.dimension_semantics<arbitrary>], iteration_bounds = array<i64: 1, 1, 1>, scalar_prefetch = 0 : i64, scratch_operands = 1 : i64, tpu.core_type = #tpu.core_type<tc>, window_params = [{transform_indices = @transform_0, window_bounds = array<i64: 8, 32>}, {transform_indices = @transform_1, window_bounds = array<i64: 32, 128>}, {transform_indices = @transform_2, window_bounds = array<i64: 1, 128>}, {transform_indices = @transform_3, window_bounds = array<i64: 8, 128>}]} {
    %c0_i32 = arith.constant 0 : i32
    %0 = arith.cmpi eq, %arg2, %c0_i32 : i32
    %1 = arith.extui %0 : i1 to i32
    %c0_i32_0 = arith.constant 0 : i32
    %2 = arith.cmpi ne, %1, %c0_i32_0 : i32
    scf.if %2 {
      %cst_10 = arith.constant 0.000000e+00 : f32
      %12 = vector.broadcast %cst_10 : f32 to vector<8x128xf32>
      %c0_11 = arith.constant 0 : index
      %c0_12 = arith.constant 0 : index
      %13 = vector.load %arg7[%c0_11, %c0_12] : memref<8x128xf32, #tpu.memory_space<vmem>>, vector<8x128xf32>
      tpu.vector_store %arg7[%c0_11, %c0_12], %12 {strides = array<i32>} : memref<8x128xf32, #tpu.memory_space<vmem>>, vector<8x128xf32>,
    } else {
    }
    %c0 = arith.constant 0 : index
    %c0_1 = arith.constant 0 : index
    %3 = vector.load %arg3[%c0, %c0_1] : memref<8x32xf32, #tpu.memory_space<vmem>>, vector<8x32xf32>
    %c0_2 = arith.constant 0 : index
    %c0_3 = arith.constant 0 : index
    %4 = vector.load %arg7[%c0_2, %c0_3] : memref<8x128xf32, #tpu.memory_space<vmem>>, vector<8x128xf32>
    %c0_4 = arith.constant 0 : index
    %c0_5 = arith.constant 0 : index
    %5 = vector.load %arg4[%c0_4, %c0_5] : memref<32x128xf32, #tpu.memory_space<vmem>>, vector<32x128xf32>
    %cst = arith.constant dense<0.000000e+00> : vector<8x128xf32>
    %6 = tpu.matmul %3, %5, %cst {dimension_numbers = #tpu.dot_dimension_numbers<[1], [0], [0], [1], [0, 0, 1, 1], [], []>} : vector<8x32xf32>, vector<32x128xf32>, vector<8x128xf32> -> vector<8x128xf32>
    %7 = arith.addf %4, %6 : vector<8x128xf32>
    %c0_6 = arith.constant 0 : index
    %c0_7 = arith.constant 0 : index
    %8 = vector.load %arg7[%c0_6, %c0_7] : memref<8x128xf32, #tpu.memory_space<vmem>>, vector<8x128xf32>
    tpu.vector_store %arg7[%c0_6, %c0_7], %7 {strides = array<i32>} : memref<8x128xf32, #tpu.memory_space<vmem>>, vector<8x128xf32>,
    %c0_i32_8 = arith.constant 0 : i32
    %9 = arith.cmpi eq, %arg2, %c0_i32_8 : i32
    %10 = arith.extui %9 : i1 to i32
    %c0_i32_9 = arith.constant 0 : i32
    %11 = arith.cmpi ne, %10, %c0_i32_9 : i32
    scf.if %11 {
      %c0_10 = arith.constant 0 : index
      %c0_11 = arith.constant 0 : index
      %12 = vector.load %arg7[%c0_10, %c0_11] : memref<8x128xf32, #tpu.memory_space<vmem>>, vector<8x128xf32>
      %c0_12 = arith.constant 0 : index
      %c0_13 = arith.constant 0 : index
      %13 = vector.load %arg5[%c0_12, %c0_13] : memref<1x128xf32, #tpu.memory_space<vmem>>, vector<1x128xf32>
      %14 = vector.broadcast %13 : vector<1x128xf32> to vector<8x128xf32>
      %15 = arith.addf %12, %14 : vector<8x128xf32>
      %c0_14 = arith.constant 0 : index
      %c0_15 = arith.constant 0 : index
      %16 = vector.load %arg6[%c0_14, %c0_15] : memref<8x128xf32, #tpu.memory_space<vmem>>, vector<8x128xf32>
      tpu.vector_store %arg6[%c0_14, %c0_15], %15 {strides = array<i32>} : memref<8x128xf32, #tpu.memory_space<vmem>>, vector<8x128xf32>,
    } else {
    }
    return
  }
  func.func @transform_0(%arg0: i32, %arg1: i32, %arg2: i32) -> (i32, i32) {
    %c0_i32 = arith.constant 0 : i32
    return %arg0, %arg2 : i32, i32
  }
  func.func @transform_1(%arg0: i32, %arg1: i32, %arg2: i32) -> (i32, i32) {
    %c0_i32 = arith.constant 0 : i32
    return %arg2, %arg1 : i32, i32
  }
  func.func @transform_2(%arg0: i32, %arg1: i32, %arg2: i32) -> (i32, i32) {
    %c0_i32 = arith.constant 0 : i32
    %c0_i32_0 = arith.constant 0 : i32
    return %c0_i32, %arg1 : i32, i32
  }
  func.func @transform_3(%arg0: i32, %arg1: i32, %arg2: i32) -> (i32, i32) {
    %c0_i32 = arith.constant 0 : i32
    return %arg0, %arg1 : i32, i32
  }
}

</mosaic_0001>

<bundles_post_ra>
// kernel: tpu_custom_call.1
= control target key start
LH: loop header
LB: loop body
LE: loop exit
PB: predicated region body
PF: predicated region fallthrough
CT: control target
= control target key end

     0   :  { %8 = vsyncpa [#allocation4], 0  ;;  %s232_s0 = inlined_call_operand.hbm [shape: f32[8,32], index: 0, kind: input, shape index: {}]   ;;  %s233_s1 = inlined_call_operand.hbm [shape: f32[32,128], index: 1, kind: input, shape index: {}]   ;;  %s234_s2 = inlined_call_operand.vmem [shape: f32[1,128], index: 2, kind: input, shape index: {}]   ;;  %s235_s3 = inlined_call_operand.hbm [shape: f32[8,128], index: 3, kind: output, shape index: {}]  }
   0x1   :  { %9 = vsyncpa [#allocation7], 0 }
   0x2   :  { %10 = vsyncpa [#allocation5], 0  ;;  %s16_s14 = sshll.u32 %s232_s0, 4  ;;  %s195_s15 = smov [#allocation3]   ;;  %s17_s14 = int_to_ptr.hbm [resolvable:$true] %s16_s14 }
   0x3   :  { %s18_s16 = sshll.u32 %s195_s15, 4  ;;  %s26_s19 = sshll.u32 %s233_s1, 4  ;;  %s19_s16 = int_to_ptr.vmem [resolvable:$true] %s18_s16  ;;  %s27_s19 = int_to_ptr.hbm [resolvable:$true] %s26_s19 }
   0x4   :  { %21 = dma.hbm_to_vmem [thread:$0]  %s17_s14, 128, %s19_s16, [#allocation4]  }
   0x5   :  { %s196_s20 = smov [#allocation6]   ;;  %s197_s22 = smov 128  }
   0x6   :  { %s28_s21 = sshll.u32 %s196_s20, 4  ;;  %s198_s23 = smov 8   ;;  %s29_s21 = int_to_ptr.vmem [resolvable:$true] %s28_s21 }
   0x7   :  { %34 = dma.hbm_to_vmem [thread:$0]  %s27_s19, 512, %s29_s21, [#allocation7], %s197_s22, %s197_s22, %s198_s23  }
   0x8   :  { %189 = dma.done.wait [#allocation4], 128  }
   0x9   :  { %190 = vsyncadd [#allocation4], 4294967168 }
   0xa   :  { %191 = dma.done.wait [#allocation7], 512  }
   0xb   :  { %192 = vsyncadd [#allocation7], 4294966784  ;;  %v55_v0 = vld [vmem:[#allocation6 + $0x18] sm:$0xff]  ;;  %v54_v1 = vld [vmem:[#allocation6 + $0x10] sm:$0xff]  ;;  %vm56_vm0 = vcmask 261120   ;;  %s199_s24 = smov [#allocation8]  }
   0xc   :  { %72 = vmatpush.msra.mxu0 %v55_v0  ;;  %v53_v2 = vld [vmem:[#allocation6 + $0x8] sm:$0xff]  ;;  %v52_v3 = vld [vmem:[#allocation6] sm:$0xff]  ;;  %v50_v4 = vld [vmem:[#allocation3] sm:$0xff]  ;;  %s97_s25 = sshll.u32 %s199_s24, 4  ;;  %s99_s28 = sshll.u32 %s235_s3, 4  ;;  %s98_s25 = int_to_ptr.vmem [resolvable:$true] %s97_s25  ;;  %s100_s28 = int_to_ptr.hbm [resolvable:$true] %s99_s28 }
   0xd   :  { %v116_v5 = vld [vmem:[%s234_s2] ss:$0 sm:$0xff] }
   0xe   :  { %73 = vmatpush.msra.mxu0 %v54_v1 }
  0x10   :  { %74 = vmatpush.msra.mxu0 %v53_v2 }
  0x12   :  { %75 = vmatpush.msra.mxu0 %v52_v3 }
  0x13   :  { %110 = vmatmul.msk.f32.vlgmr.msra.gmra.mxu0 %vm56_vm0, %v50_v4 }
  0x90   :  { %v77_v6 = vpop.f32.mrf.mxu0 }
  0x91   :  { %v90_v7 = vadd.f32 %v116_v5, %v77_v6 }
  0x93   :  { %91 = vst [vmem:[#allocation8] sm:$0xff] %v90_v7 }
  0x94   :  { %102 = dma.vmem_to_hbm [thread:$0]  %s98_s25, 128, %s100_s28, [#allocation5]  }
  0x95   :  { %193 = dma.done.wait [#allocation5], 128  }
  0x96   :  { %194 = vsyncadd [#allocation5], 4294967168 }
  0x97   :  { %107 = vsyncpa [#allocation4], 1 }
  0x98   :  { %108 = vsyncpa [#allocation7], 1 }
  0x99   :  { %109 = vsyncpa [#allocation5], 1 }

</bundles_post_ra>
